<compile_context>
chip_gen: v7x
topology: tpu7x:2x2x1
jax: 0.10.0
libtpu: 0.0.40
codegen_flags: <defaults>
</compile_context>

<pallas_src>
import functools
import math

import jax
import jax.numpy as jnp
from jax.experimental import pallas as pl
from jax.experimental.pallas import tpu as pltpu

_F32 = jnp.float32


# ---------------------------------------------------------------------------
# Best-effort hardware queries (conservative fallbacks).
# ---------------------------------------------------------------------------
def _vmem_capacity_bytes():
    try:
        info = pltpu.get_tpu_info()
        for name in ("vmem_capacity_bytes", "vmem_size_bytes", "vmem_bytes"):
            val = getattr(info, name, None)
            if val:
                return int(val)
    except Exception:
        pass
    return 64 * 1024 * 1024  # v7x per-core VMEM: a safe lower bound everywhere.


def _roll_probe_kernel(x_ref, o_ref):
    o_ref[...] = pltpu.roll(x_ref[...], 1, 2)


@functools.lru_cache(maxsize=None)
def _roll_convention():
    """'numpy' if roll(x,1)[c]==x[c-1], 'shift' if ==x[c+1], None if unusable."""
    try:
        x = jax.lax.broadcasted_iota(jnp.int32, (2, 8, 128), 2)
        y = pl.pallas_call(
            _roll_probe_kernel,
            out_shape=jax.ShapeDtypeStruct((2, 8, 128), jnp.int32),
        )(x)
        v = int(jax.device_get(y)[0, 0, 1])
        if v == 0:
            return "numpy"
        if v == 2:
            return "shift"
    except Exception:
        pass
    return None


def _roll_shift_for_next(step, size):
    """Shift s.t. pltpu.roll(x, shift, axis)[..., c] == x[..., (c + step) % size]."""
    conv = _roll_convention()
    if conv == "numpy":
        return (size - step) % size
    if conv == "shift":
        return step
    return None


# ---------------------------------------------------------------------------
# Block planning against padded VMEM footprints.
# ---------------------------------------------------------------------------
def _ceil_to(x, m):
    return -(-x // m) * m


def _largest_divisor_le(n, cap):
    cap = max(1, min(n, int(cap)))
    for d in range(cap, 0, -1):
        if n % d == 0:
            return d
    return 1


def _plan_blocks(B, Hp, Wp, in_itemsize, c_itemsize, budget_bytes):
    """Pick (tb, th) so the (8,128)-padded VMEM footprint stays under budget."""
    lane_pad = _ceil_to(Wp, 128)
    s_in = (8 * 4) // in_itemsize      # sublane tile of the input dtype
    s_c = (8 * 4) // c_itemsize

    def footprint(tb, th):
        in_b = tb * _ceil_to(th, s_in) * lane_pad * in_itemsize   # one input block
        d_b = tb * _ceil_to(th, s_c) * lane_pad * c_itemsize      # d & temporaries
        return 4 * in_b + 3 * d_b  # 2 inputs x 2 pipeline buffers + intermediates

    if footprint(1, Hp) <= budget_bytes:
        th = Hp
        tb = _largest_divisor_le(B, budget_bytes // footprint(1, Hp))
        # Only force extra grid steps when there is enough HBM traffic to
        # amortize the ~0.35us/step overhead (>=2 steps lets the "parallel"
        # batch axis split across the two v7x TensorCores).
        total_raw = 2 * B * Hp * Wp * in_itemsize
        desired = 1
        if B > 1:
            if total_raw >= (64 << 20):
                desired = min(8, B)
            elif total_raw >= (4 << 20):
                desired = min(2, B)
        if B // tb < desired:
            tb = _largest_divisor_le(B, B // desired)
    else:
        # A single image does not fit: tile the (packed) row axis.  Tiles keep
        # the sublane constraint (multiple of the dtype's sublane tile).
        tb = 1
        cands = [d for d in range(Hp, 0, -1)
                 if Hp % d == 0 and (d == Hp or d % s_in == 0)]
        th = next((d for d in cands if footprint(1, d) <= budget_bytes), cands[-1])
        # TODO(synk): if even the smallest legal row tile exceeds the budget
        # (pathologically wide W), the W axis would need tiling too.
    return tb, th


# ---------------------------------------------------------------------------
# Kernel.
# ---------------------------------------------------------------------------
def _make_kernel(*, w, k, wp, th, compute_dtype, gy_shift, gxa_shift, tile_h):
    """|grad| partial-sum kernel for one (tb, th, wp) block (k packed rows)."""
    kw1 = (k - 1) * w  # lane offset of the last packed image row in a block row

    def seam_free_mask(width):
        # True for lane columns whose right neighbour is in the same image row.
        lane = jax.lax.broadcasted_iota(jnp.int32, (1, 1, width), 2)
        valid = None
        for j in range(1, k + 1):
            c = lane != (j * w - 1)
            valid = c if valid is None else jnp.logical_and(valid, c)
        return valid

    def kernel(p_ref, t_ref, out_ref, *carry):
        d = p_ref[...].astype(compute_dtype) - t_ref[...].astype(compute_dtype)

        # ---- grady: neighbours along the lane axis, image seams masked out.
        if gy_shift is not None:
            nxt = pltpu.roll(d, gy_shift, 2)
            sy = jnp.sum(jnp.where(seam_free_mask(wp), jnp.abs(nxt - d), 0.0),
                         dtype=_F32)
        else:
            dif = jnp.abs(d[:, :, 1:] - d[:, :, :-1])
            if k > 1:
                dif = jnp.where(seam_free_mask(wp - 1), dif, 0.0)
            sy = jnp.sum(dif, dtype=_F32)

        # ---- gradx.
        sx = jnp.zeros((), _F32)
        # (a) adjacent image rows packed side-by-side within one block row.
        if k > 1:
            if gxa_shift is not None:
                lane = jax.lax.broadcasted_iota(jnp.int32, (1, 1, wp), 2)
                nxt = pltpu.roll(d, gxa_shift, 2)
                sx += jnp.sum(jnp.where(lane < kw1, jnp.abs(nxt - d), 0.0),
                              dtype=_F32)
            else:
                sx += jnp.sum(jnp.abs(d[:, :, w:] - d[:, :, :kw1]), dtype=_F32)
        # (b) adjacent image rows split across consecutive block rows.
        if th > 1:
            sx += jnp.sum(jnp.abs(d[:, 1:, :w] - d[:, :-1, kw1:]), dtype=_F32)
        # (c) adjacent image rows split across H tiles (carried last row).
        if tile_h:
            carry_ref, = carry
            h_idx = pl.program_id(1)
            bsum = jnp.sum(jnp.abs(d[:, 0:1, :w] - carry_ref[:, :, kw1:]),
                           dtype=_F32)
            sx += jnp.where(h_idx > 0, bsum, 0.0)   # h==0: carry is unused garbage
            carry_ref[...] = d[:, th - 1:th, :]

        lane2 = jax.lax.broadcasted_iota(jnp.int32, (1, 1, 2), 2)
        contrib = jnp.where(lane2 == 0, sx, sy)     # merged (sx, sy) output block
        if tile_h:
            @pl.when(pl.program_id(1) == 0)
            def _():
                out_ref[...] = jnp.zeros_like(out_ref)
            out_ref[...] += contrib
        else:
            out_ref[...] = contrib

    return kernel


# ---------------------------------------------------------------------------
# Public wrapper.
# ---------------------------------------------------------------------------
def gradient_loss(predict, target, loss_weight=1.0, *, block_plan=None):
    """Forward pass of GradientLoss.  block_plan=(tb, th) is a tuning/test override."""
    assert predict.shape == target.shape, "predict/target shape mismatch"
    assert predict.ndim >= 2, "need at least (H, W) dims"
    *lead, H, W = predict.shape
    B = int(math.prod(lead)) if lead else 1
    # NOTE: H == 1 or W == 1 yields an empty gradient; like nn.L1Loss on empty
    # tensors the result is NaN (zero-element mean) -- kept for parity.

    p = predict.reshape(B, H, W)
    t = target.reshape(B, H, W)
    if p.dtype not in (jnp.float32, jnp.bfloat16):
        p = p.astype(_F32)
        t = t.astype(_F32)
    compute_dtype = jnp.bfloat16 if p.dtype == jnp.bfloat16 else _F32
    in_itemsize = jnp.dtype(p.dtype).itemsize
    c_itemsize = jnp.dtype(compute_dtype).itemsize

    # Lane packing: fold k consecutive image rows side-by-side so narrow images
    # fill the 128-lane vregs (pure reshape of a contiguous array -> no copy).
    k = 1
    if W < 128:
        k = max(1, 128 // W)
        while k > 1 and H % k:
            k -= 1
    Hp, Wp = H // k, W * k
    p = p.reshape(B, Hp, Wp)
    t = t.reshape(B, Hp, Wp)

    # Generation-aware block sizing + explicit scoped-VMEM limit.
    vmem_limit = (_vmem_capacity_bytes() * 3) // 4
    budget = (vmem_limit * 3) // 4
    if block_plan is None:
        tb, th = _plan_blocks(B, Hp, Wp, in_itemsize, c_itemsize, budget)
    else:
        tb, th = block_plan
        assert B % tb == 0 and Hp % th == 0 and (th == Hp or th % 8 == 0)
    nb, nh = B // tb, Hp // th
    tile_h = nh > 1

    use_roll = (Wp % 128 == 0) and (_roll_convention() is not None)
    gy_shift = _roll_shift_for_next(1, Wp) if use_roll else None
    gxa_shift = _roll_shift_for_next(W, Wp) if (use_roll and k > 1) else None

    kernel = _make_kernel(w=W, k=k, wp=Wp, th=th, compute_dtype=compute_dtype,
                          gy_shift=gy_shift, gxa_shift=gxa_shift, tile_h=tile_h)

    cost = pl.CostEstimate(
        flops=10 * B * Hp * Wp,
        transcendentals=0,
        bytes_accessed=2 * B * Hp * Wp * in_itemsize + nb * 2 * 4,
    )

    partial = pl.pallas_call(
        kernel,
        out_shape=jax.ShapeDtypeStruct((nb, 1, 2), _F32),
        grid=(nb, nh),
        in_specs=[pl.BlockSpec((tb, th, Wp), lambda b, h: (b, h, 0)),
                  pl.BlockSpec((tb, th, Wp), lambda b, h: (b, h, 0))],
        out_specs=pl.BlockSpec((1, 1, 2), lambda b, h: (b, 0, 0)),
        scratch_shapes=([pltpu.VMEM((tb, 1, Wp), compute_dtype)] if tile_h else []),
        compiler_params=pltpu.CompilerParams(
            dimension_semantics=("parallel", "arbitrary"),
            vmem_limit_bytes=int(vmem_limit)),
        cost_estimate=cost,
    )(p, t)

    count_x = B * (H - 1) * W   # elements in gradx (L1Loss mean denominator)
    count_y = B * H * (W - 1)   # elements in grady
    loss = (jnp.sum(partial[:, :, 0]) / count_x +
            jnp.sum(partial[:, :, 1]) / count_y)
    # TODO(synk): forward only; training would need a jax.custom_vjp around the pallas_call.
    return (loss_weight * loss).astype(_F32)


def _reference(predict, target, loss_weight=1.0):
    pgx = predict[..., 1:, :] - predict[..., :-1, :]
    pgy = predict[..., 1:] - predict[..., :-1]
    tgx = target[..., 1:, :] - target[..., :-1, :]
    tgy = target[..., 1:] - target[..., :-1]
    return loss_weight * (jnp.mean(jnp.abs(pgx - tgx)) +
                          jnp.mean(jnp.abs(pgy - tgy)))


if __name__ == "__main__":
    # 1) Nominal NCHW use case: exercises lane packing (W=16 -> k=8, Wp=128),
    #    the roll-based gradients and the single-step fast path.
    kp, kt = jax.random.split(jax.random.PRNGKey(0))
    predict = jax.random.uniform(kp, (2, 4, 16, 16), _F32)
    target = jax.random.uniform(kt, (2, 4, 16, 16), _F32)
    loss_fn = jax.jit(functools.partial(gradient_loss, loss_weight=1.0))
    loss = jax.block_until_ready(loss_fn(predict, target))
    ref = _reference(predict, target, 1.0)
    assert jnp.allclose(loss, ref, rtol=1e-4, atol=1e-5), (float(loss), float(ref))

    # 2) Forced row tiling: exercises the H-tile carry + output accumulator path.
    kp, kt = jax.random.split(jax.random.PRNGKey(1))
    p2 = jax.random.uniform(kp, (2, 32, 128), _F32)
    t2 = jax.random.uniform(kt, (2, 32, 128), _F32)
    l2 = jax.block_until_ready(gradient_loss(p2, t2, 0.5, block_plan=(1, 8)))
    r2 = _reference(p2, t2, 0.5)
    assert jnp.allclose(l2, r2, rtol=1e-4, atol=1e-5), (float(l2), float(r2))

    # 3) Non-128-multiple packed width: exercises the slice fallback paths.
    kp, kt = jax.random.split(jax.random.PRNGKey(2))
    p3 = jax.random.uniform(kp, (3, 16, 48), _F32)
    t3 = jax.random.uniform(kt, (3, 16, 48), _F32)
    l3 = jax.block_until_ready(gradient_loss(p3, t3, 2.0))
    r3 = _reference(p3, t3, 2.0)
    assert jnp.allclose(l3, r3, rtol=1e-4, atol=1e-5), (float(l3), float(r3))

    print("KERNEL_OK")
</pallas_src>

<mosaic_0001>
module attributes {stable_mosaic.version = 11 : i64} {
  func.func @kernel(%arg0: i32, %arg1: i32, %arg2: memref<8x2x128xf32, #tpu.memory_space<vmem>>, %arg3: memref<8x2x128xf32, #tpu.memory_space<vmem>>, %arg4: memref<1x1x2xf32, #tpu.memory_space<vmem>>) attributes {dimension_semantics = [#tpu.dimension_semantics<parallel>, #tpu.dimension_semantics<arbitrary>], iteration_bounds = array<i64: 1, 1>, scalar_prefetch = 0 : i64, scratch_operands = 0 : i64, tpu.core_type = #tpu.core_type<tc>, window_params = [{transform_indices = @transform_0, window_bounds = array<i64: 8, 2, 128>}, {transform_indices = @transform_1, window_bounds = array<i64: 8, 2, 128>}, {transform_indices = @transform_2, window_bounds = array<i64: 1, 1, 2>}]} {
    %c0 = arith.constant 0 : index
    %c0_0 = arith.constant 0 : index
    %c0_1 = arith.constant 0 : index
    %0 = vector.load %arg2[%c0, %c0_0, %c0_1] : memref<8x2x128xf32, #tpu.memory_space<vmem>>, vector<8x2x128xf32>
    %c0_2 = arith.constant 0 : index
    %c0_3 = arith.constant 0 : index
    %c0_4 = arith.constant 0 : index
    %1 = vector.load %arg3[%c0_2, %c0_3, %c0_4] : memref<8x2x128xf32, #tpu.memory_space<vmem>>, vector<8x2x128xf32>
    %2 = arith.subf %0, %1 : vector<8x2x128xf32>
    %3 = vector.extract_strided_slice %2 {offsets = [0, 0, 1], sizes = [8, 2, 127], strides = [1, 1, 1]} : vector<8x2x128xf32> to vector<8x2x127xf32>
    %4 = vector.extract_strided_slice %2 {offsets = [0, 0, 0], sizes = [8, 2, 127], strides = [1, 1, 1]} : vector<8x2x128xf32> to vector<8x2x127xf32>
    %5 = arith.subf %3, %4 : vector<8x2x127xf32>
    %6 = math.absf %5 : vector<8x2x127xf32>
    %7 = tpu.iota {dimensions = array<i32: 2>} : vector<1x1x127xi32>
    %c15_i32 = arith.constant 15 : i32
    %8 = vector.broadcast %c15_i32 : i32 to vector<1x1x127xi32>
    %9 = arith.cmpi ne, %7, %8 : vector<1x1x127xi32>
    %c31_i32 = arith.constant 31 : i32
    %10 = vector.broadcast %c31_i32 : i32 to vector<1x1x127xi32>
    %11 = arith.cmpi ne, %7, %10 : vector<1x1x127xi32>
    %12 = arith.andi %9, %11 : vector<1x1x127xi1>
    %c47_i32 = arith.constant 47 : i32
    %13 = vector.broadcast %c47_i32 : i32 to vector<1x1x127xi32>
    %14 = arith.cmpi ne, %7, %13 : vector<1x1x127xi32>
    %15 = arith.andi %12, %14 : vector<1x1x127xi1>
    %c63_i32 = arith.constant 63 : i32
    %16 = vector.broadcast %c63_i32 : i32 to vector<1x1x127xi32>
    %17 = arith.cmpi ne, %7, %16 : vector<1x1x127xi32>
    %18 = arith.andi %15, %17 : vector<1x1x127xi1>
    %c79_i32 = arith.constant 79 : i32
    %19 = vector.broadcast %c79_i32 : i32 to vector<1x1x127xi32>
    %20 = arith.cmpi ne, %7, %19 : vector<1x1x127xi32>
    %21 = arith.andi %18, %20 : vector<1x1x127xi1>
    %c95_i32 = arith.constant 95 : i32
    %22 = vector.broadcast %c95_i32 : i32 to vector<1x1x127xi32>
    %23 = arith.cmpi ne, %7, %22 : vector<1x1x127xi32>
    %24 = arith.andi %21, %23 : vector<1x1x127xi1>
    %c111_i32 = arith.constant 111 : i32
    %25 = vector.broadcast %c111_i32 : i32 to vector<1x1x127xi32>
    %26 = arith.cmpi ne, %7, %25 : vector<1x1x127xi32>
    %27 = arith.andi %24, %26 : vector<1x1x127xi1>
    %c127_i32 = arith.constant 127 : i32
    %28 = vector.broadcast %c127_i32 : i32 to vector<1x1x127xi32>
    %29 = arith.cmpi ne, %7, %28 : vector<1x1x127xi32>
    %30 = arith.andi %27, %29 : vector<1x1x127xi1>
    %cst = arith.constant 0.000000e+00 : f32
    %31 = vector.shape_cast %30 : vector<1x1x127xi1> to vector<1x1x127xi1>
    %32 = vector.broadcast %31 : vector<1x1x127xi1> to vector<8x2x127xi1>
    %33 = vector.broadcast %cst : f32 to vector<8x2x127xf32>
    %34 = arith.select %32, %6, %33 : vector<8x2x127xi1>, vector<8x2x127xf32>
    %35 = vector.shape_cast %34 : vector<8x2x127xf32> to vector<1x8x2x127xf32>
    %cst_5 = arith.constant dense<0.000000e+00> : vector<1xf32>
    %36 = vector.multi_reduction <add>, %35, %cst_5 [1, 2, 3] : vector<1x8x2x127xf32> to vector<1xf32>
    %37 = vector.shape_cast %36 : vector<1xf32> to vector<1x1x1x1xf32>
    %38 = vector.extract %37[0, 0, 0, 0] : f32 from vector<1x1x1x1xf32>
    %39 = vector.extract_strided_slice %2 {offsets = [0, 0, 16], sizes = [8, 2, 112], strides = [1, 1, 1]} : vector<8x2x128xf32> to vector<8x2x112xf32>
    %40 = vector.extract_strided_slice %2 {offsets = [0, 0, 0], sizes = [8, 2, 112], strides = [1, 1, 1]} : vector<8x2x128xf32> to vector<8x2x112xf32>
    %41 = arith.subf %39, %40 : vector<8x2x112xf32>
    %42 = math.absf %41 : vector<8x2x112xf32>
    %43 = vector.shape_cast %42 : vector<8x2x112xf32> to vector<1x8x2x112xf32>
    %cst_6 = arith.constant dense<0.000000e+00> : vector<1xf32>
    %44 = vector.multi_reduction <add>, %43, %cst_6 [1, 2, 3] : vector<1x8x2x112xf32> to vector<1xf32>
    %45 = vector.shape_cast %44 : vector<1xf32> to vector<1x1x1x1xf32>
    %46 = vector.extract %45[0, 0, 0, 0] : f32 from vector<1x1x1x1xf32>
    %cst_7 = arith.constant 0.000000e+00 : f32
    %47 = arith.addf %cst_7, %46 : f32
    %48 = vector.extract_strided_slice %2 {offsets = [0, 1, 0], sizes = [8, 1, 16], strides = [1, 1, 1]} : vector<8x2x128xf32> to vector<8x1x16xf32>
    %49 = vector.extract_strided_slice %2 {offsets = [0, 0, 112], sizes = [8, 1, 16], strides = [1, 1, 1]} : vector<8x2x128xf32> to vector<8x1x16xf32>
    %50 = arith.subf %48, %49 : vector<8x1x16xf32>
    %51 = math.absf %50 : vector<8x1x16xf32>
    %52 = vector.shape_cast %51 : vector<8x1x16xf32> to vector<1x8x1x16xf32>
    %cst_8 = arith.constant dense<0.000000e+00> : vector<1xf32>
    %53 = vector.multi_reduction <add>, %52, %cst_8 [1, 2, 3] : vector<1x8x1x16xf32> to vector<1xf32>
    %54 = vector.shape_cast %53 : vector<1xf32> to vector<1x1x1x1xf32>
    %55 = vector.extract %54[0, 0, 0, 0] : f32 from vector<1x1x1x1xf32>
    %56 = arith.addf %47, %55 : f32
    %57 = tpu.iota {dimensions = array<i32: 2>} : vector<1x1x2xi32>
    %c0_i32 = arith.constant 0 : i32
    %58 = vector.broadcast %c0_i32 : i32 to vector<1x1x2xi32>
    %59 = arith.cmpi eq, %57, %58 : vector<1x1x2xi32>
    %60 = vector.broadcast %56 : f32 to vector<1x1x2xf32>
    %61 = vector.broadcast %38 : f32 to vector<1x1x2xf32>
    %62 = arith.select %59, %60, %61 : vector<1x1x2xi1>, vector<1x1x2xf32>
    %c0_9 = arith.constant 0 : index
    %c0_10 = arith.constant 0 : index
    %c0_11 = arith.constant 0 : index
    %63 = vector.load %arg4[%c0_9, %c0_10, %c0_11] : memref<1x1x2xf32, #tpu.memory_space<vmem>>, vector<1x1x2xf32>
    tpu.vector_store %arg4[%c0_9, %c0_10, %c0_11], %62 {strides = array<i32>} : memref<1x1x2xf32, #tpu.memory_space<vmem>>, vector<1x1x2xf32>,
    return
  }
  func.func @transform_0(%arg0: i32, %arg1: i32) -> (i32, i32, i32) {
    %c0_i32 = arith.constant 0 : i32
    %c0_i32_0 = arith.constant 0 : i32
    return %arg0, %arg1, %c0_i32 : i32, i32, i32
  }
  func.func @transform_1(%arg0: i32, %arg1: i32) -> (i32, i32, i32) {
    %c0_i32 = arith.constant 0 : i32
    %c0_i32_0 = arith.constant 0 : i32
    return %arg0, %arg1, %c0_i32 : i32, i32, i32
  }
  func.func @transform_2(%arg0: i32, %arg1: i32) -> (i32, i32, i32) {
    %c0_i32 = arith.constant 0 : i32
    %c0_i32_0 = arith.constant 0 : i32
    %c0_i32_1 = arith.constant 0 : i32
    return %arg0, %c0_i32, %c0_i32_0 : i32, i32, i32
  }
}

</mosaic_0001>

<bundles_post_ra>
// kernel: gradient_loss.1
= control target key start
LH: loop header
LB: loop body
LE: loop exit
PB: predicated region body
PF: predicated region fallthrough
CT: control target
= control target key end

     0   :  { %s384_s17 = smov 16   ;;  %s385_s18 = smov 1   ;;  %vm337_vm15 = vcmask 122880   ;;  %s616_s0 = inlined_call_operand.vmem [shape: f32[8,2,128], index: 0, kind: input, shape index: {}]   ;;  %s617_s1 = inlined_call_operand.vmem [shape: f32[8,2,128], index: 1, kind: input, shape index: {}]   ;;  %s618_s2 = inlined_call_operand.vmem [shape: f32[1,1,2], index: 2, kind: output, shape index: {}]  }
   0x1   :  { %v11_v0 = vld [vmem:[%s616_s0] sm:$0x3]  ;;  %v12_v2 = vld [vmem:[%s616_s0 + $0x2] sm:$0x3]  ;;  %v13_v6 = vld [vmem:[%s616_s0 + $0x4] sm:$0x3] }
   0x2   :  { %v19_v1 = vld [vmem:[%s617_s1] sm:$0x3]  ;;  %v20_v4 = vld [vmem:[%s617_s1 + $0x2] sm:$0x3]  ;;  %v21_v7 = vld [vmem:[%s617_s1 + $0x4] sm:$0x3] }
   0x3   :  { %v413_v3 = vsub.f32 %v11_v0, %v19_v1  ;;  %v422_v5 = vsub.f32 %v12_v2, %v20_v4  ;;  %v434_v8 = vsub.f32 %v13_v6, %v21_v7  ;;  %v14_v9 = vld [vmem:[%s616_s0 + $0x6] sm:$0x3]  ;;  %v15_v12 = vld [vmem:[%s616_s0 + $0x8] sm:$0x3]  ;;  %v16_v15 = vld [vmem:[%s616_s0 + $0xa] sm:$0x3] }
   0x4   :  { %v22_v10 = vld [vmem:[%s617_s1 + $0x6] sm:$0x3]  ;;  %v23_v13 = vld [vmem:[%s617_s1 + $0x8] sm:$0x3]  ;;  %v24_v16 = vld [vmem:[%s617_s1 + $0xa] sm:$0x3] }
   0x5   :  { %167 = vrot.lane.b32.xlu1 %v413_v3, %s384_s17  ;;  %43 = vrot.lane.b32.xlu0 %v413_v3, %s385_s18  ;;  %v446_v11 = vsub.f32 %v14_v9, %v22_v10  ;;  %v458_v14 = vsub.f32 %v15_v12, %v23_v13  ;;  %v470_v17 = vsub.f32 %v16_v15, %v24_v16  ;;  %v17_v18 = vld [vmem:[%s616_s0 + $0xc] sm:$0x3]  ;;  %v18_v21 = vld [vmem:[%s616_s0 + $0xe] sm:$0x3]  ;;  %v265_v24 = vrot.slane %v413_v3, 7  ;;  %s386_s0 = smov 127  }
   0x6   :  { %v25_v19 = vld [vmem:[%s617_s1 + $0xc] sm:$0x3]  ;;  %v26_v22 = vld [vmem:[%s617_s1 + $0xe] sm:$0x3]  ;;  %v266_v25 = vrot.slane %v422_v5, 7  ;;  %v267_v26 = vrot.slane %v434_v8, 7 }
   0x7   :  { %v482_v20 = vsub.f32 %v17_v18, %v25_v19  ;;  %v494_v23 = vsub.f32 %v18_v21, %v26_v22  ;;  %v268_v27 = vrot.slane %v446_v11, 7  ;;  %v269_v28 = vrot.slane %v458_v14, 7  ;;  %s387_s1 = smov 112  }
   0x8   :  { %v270_v29 = vrot.slane %v470_v17, 7 }
   0x9   :  { %169 = vrot.lane.b32.xlu1 %v422_v5, %s384_s17  ;;  %45 = vrot.lane.b32.xlu0 %v422_v5, %s385_s18  ;;  %v271_v30 = vrot.slane %v482_v20, 7  ;;  %v272_v31 = vrot.slane %v494_v23, 7 }
   0xd   :  { %171 = vrot.lane.b32.xlu1 %v434_v8, %s384_s17  ;;  %47 = vrot.lane.b32.xlu0 %v434_v8, %s385_s18 }
  0x11   :  { %173 = vrot.lane.b32.xlu1 %v446_v11, %s384_s17  ;;  %49 = vrot.lane.b32.xlu0 %v446_v11, %s385_s18 }
  0x15   :  { %175 = vrot.lane.b32.xlu1 %v458_v14, %s384_s17  ;;  %51 = vrot.lane.b32.xlu0 %v458_v14, %s385_s18 }
  0x19   :  { %53 = vrot.lane.b32.xlu0 %v470_v17, %s385_s18  ;;  %177 = vrot.lane.b32.xlu1 %v470_v17, %s384_s17 }
  0x1d   :  { %55 = vrot.lane.b32.xlu0 %v482_v20, %s385_s18  ;;  %179 = vrot.lane.b32.xlu1 %v482_v20, %s384_s17 }
  0x21   :  { %57 = vrot.lane.b32.xlu0 %v494_v23, %s385_s18  ;;  %181 = vrot.lane.b32.xlu1 %v494_v23, %s384_s17 }
  0x25   :  { %273 = vrot.lane.b32.xlu0 %v265_v24, %s384_s17  ;;  %275 = vrot.lane.b32.xlu1 %v266_v25, %s384_s17  ;;  %v83_v24 = vlaneseq }
  0x27   :  { %v548_v25 = vand.u32 127, %v83_v24 }
  0x29   :  { %277 = vrot.lane.b32.xlu0 %v267_v26, %s384_s17  ;;  %279 = vrot.lane.b32.xlu1 %v268_v27, %s384_s17  ;;  %vm85_vm0 = vcmp.ne.s32.totalorder %v548_v25, 15  ;;  %vm86_vm1 = vcmp.ne.s32.totalorder %v548_v25, 31  ;;  %vm88_vm3 = vcmp.ne.s32.totalorder %v548_v25, 47  ;;  %vm90_vm5 = vcmp.ne.s32.totalorder %v548_v25, 63 }
  0x2a   :  { %vm87_vm2 = vmand %vm85_vm0, %vm86_vm1  ;;  %vm92_vm7 = vcmp.ne.s32.totalorder %v548_v25, 79  ;;  %vm94_vm9 = vcmp.ne.s32.totalorder %v548_v25, 95  ;;  %vm96_vm11 = vcmp.ne.s32.totalorder %v548_v25, 111  ;;  %vm98_vm13 = vcmp.ne.s32.totalorder %v548_v25, 127 }
  0x2b   :  { %vm89_vm4 = vmand %vm87_vm2, %vm88_vm3  ;;  %vm142_vm1 = vcmask 1033216   ;;  %vm239_vm2 = vcmask 910336   ;;  %vm363_vm3 = vcmp.eq.s32.totalorder %v548_v25, 0 }
  0x2c   :  { %vm91_vm6 = vmand %vm89_vm4, %vm90_vm5  ;;  %vm367_vm4 = vcmask 8192  }
  0x2d   :  { %281 = vrot.lane.b32.xlu0 %v269_v28, %s384_s17  ;;  %283 = vrot.lane.b32.xlu1 %v270_v29, %s384_s17  ;;  %vm93_vm8 = vmand %vm91_vm6, %vm92_vm7 }
  0x2e   :  { %vm95_vm10 = vmand %vm93_vm8, %vm94_vm9 }
  0x2f   :  { %vm97_vm12 = vmand %vm95_vm10, %vm96_vm11 }
  0x30   :  { %vm99_vm14 = vmand %vm97_vm12, %vm98_vm13 }
  0x31   :  { %285 = vrot.lane.b32.xlu0 %v271_v30, %s384_s17  ;;  %287 = vrot.lane.b32.xlu1 %v272_v31, %s384_s17 }
  0x77   :  { %v168_v32 = vpop.permute.xlu1 %167  ;;  %v44_v33 = vpop.permute.xlu0 %43 }
  0x78   :  { %v67_v34 = vsub.f32 %v413_v3, %v44_v33  ;;  %v191_v35 = vsub.f32 %v413_v3, %v168_v32 }
  0x7a   :  { %v75_v36 = vand.u32 2147483647, %v67_v34  ;;  %v199_v40 = vand.u32 2147483647, %v191_v35 }
  0x7b   :  { %v170_v37 = vpop.permute.xlu1 %169  ;;  %v46_v38 = vpop.permute.xlu0 %45 }
  0x7c   :  { %v68_v39 = vsub.f32 %v422_v5, %v46_v38  ;;  %110 = vrot.lane.b32.xlu0 %v75_v36, %s386_s0  ;;  %v192_v41 = vsub.f32 %v422_v5, %v170_v37 }
  0x7e   :  { %v76_v42 = vand.u32 2147483647, %v68_v39  ;;  %v200_v46 = vand.u32 2147483647, %v192_v41 }
  0x7f   :  { %v172_v43 = vpop.permute.xlu1 %171  ;;  %v48_v44 = vpop.permute.xlu0 %47 }
  0x80   :  { %v193_v45 = vsub.f32 %v434_v8, %v172_v43  ;;  %112 = vrot.lane.b32.xlu1 %v76_v42, %s386_s0  ;;  %215 = vrot.lane.b32.xlu0 %v199_v40, %s387_s1  ;;  %v69_v48 = vsub.f32 %v434_v8, %v48_v44  ;;  %v388_v43 = vmov 0  }
  0x82   :  { %v201_v47 = vand.u32 2147483647, %v193_v45  ;;  %v77_v52 = vand.u32 2147483647, %v69_v48 }
  0x83   :  { %v174_v49 = vpop.permute.xlu1 %173  ;;  %v50_v50 = vpop.permute.xlu0 %49 }
  0x84   :  { %v70_v51 = vsub.f32 %v446_v11, %v50_v50  ;;  %217 = vrot.lane.b32.xlu1 %v200_v46, %s387_s1  ;;  %219 = vrot.lane.b32.xlu0 %v201_v47, %s387_s1  ;;  %v194_v53 = vsub.f32 %v446_v11, %v174_v49 }
  0x86   :  { %v78_v54 = vand.u32 2147483647, %v70_v51  ;;  %v202_v58 = vand.u32 2147483647, %v194_v53 }
  0x87   :  { %v176_v55 = vpop.permute.xlu1 %175  ;;  %v52_v56 = vpop.permute.xlu0 %51 }
  0x88   :  { %v195_v57 = vsub.f32 %v458_v14, %v176_v55  ;;  %114 = vrot.lane.b32.xlu1 %v77_v52, %s386_s0  ;;  %116 = vrot.lane.b32.xlu0 %v78_v54, %s386_s0  ;;  %v71_v60 = vsub.f32 %v458_v14, %v52_v56 }
  0x8a   :  { %v203_v59 = vand.u32 2147483647, %v195_v57  ;;  %v79_v1 = vand.u32 2147483647, %v71_v60 }
  0x8b   :  { %v54_v61 = vpop.permute.xlu0 %53  ;;  %v178_v62 = vpop.permute.xlu1 %177 }
  0x8c   :  { %v72_v63 = vsub.f32 %v470_v17, %v54_v61  ;;  %221 = vrot.lane.b32.xlu1 %v202_v58, %s387_s1  ;;  %223 = vrot.lane.b32.xlu0 %v203_v59, %s387_s1  ;;  %v196_v0 = vsub.f32 %v470_v17, %v178_v62 }
  0x8e   :  { %v80_v2 = vand.u32 2147483647, %v72_v63  ;;  %v204_v7 = vand.u32 2147483647, %v196_v0 }
  0x8f   :  { %v56_v4 = vpop.permute.xlu0 %55  ;;  %v180_v6 = vpop.permute.xlu1 %179 }
  0x90   :  { %v73_v9 = vsub.f32 %v482_v20, %v56_v4  ;;  %118 = vrot.lane.b32.xlu1 %v79_v1, %s386_s0  ;;  %120 = vrot.lane.b32.xlu0 %v80_v2, %s386_s0  ;;  %v197_v10 = vsub.f32 %v482_v20, %v180_v6 }
  0x92   :  { %v81_v12 = vand.u32 2147483647, %v73_v9  ;;  %v205_v16 = vand.u32 2147483647, %v197_v10 }
  0x93   :  { %v58_v13 = vpop.permute.xlu0 %57  ;;  %v182_v15 = vpop.permute.xlu1 %181 }
  0x94   :  { %v74_v18 = vsub.f32 %v494_v23, %v58_v13  ;;  %225 = vrot.lane.b32.xlu1 %v204_v7, %s387_s1  ;;  %122 = vrot.lane.b32.xlu0 %v81_v12, %s386_s0  ;;  %v198_v19 = vsub.f32 %v494_v23, %v182_v15 }
  0x96   :  { %v82_v21 = vand.u32 2147483647, %v74_v18  ;;  %v206_v22 = vand.u32 2147483647, %v198_v19 }
  0x97   :  { %v274_v26 = vpop.permute.xlu0 %273  ;;  %v276_v27 = vpop.permute.xlu1 %275 }
  0x98   :  { %227 = vrot.lane.b32.xlu1 %v205_v16, %s387_s1  ;;  %124 = vrot.lane.b32.xlu0 %v82_v21, %s386_s0  ;;  %v297_v32 = vsub.f32 %v413_v3, %v274_v26  ;;  %v298_v33 = vsub.f32 %v422_v5, %v276_v27  ;;  %v564_v5 = vsel %vm99_vm14, 1, %v388_v43 }
  0x99   :  { %vm101_vm0 = vcmp.eq.s32.totalorder %v564_v5, 1 }
  0x9a   :  { %v305_v35 = vand.u32 2147483647, %v297_v32  ;;  %v306_v36 = vand.u32 2147483647, %v298_v33 }
  0x9b   :  { %v278_v28 = vpop.permute.xlu0 %277  ;;  %v280_v29 = vpop.permute.xlu1 %279 }
  0x9c   :  { %229 = vrot.lane.b32.xlu1 %v206_v22, %s387_s1  ;;  %v299_v37 = vsub.f32 %v434_v8, %v278_v28  ;;  %v321_v40 = vrot.slane %v305_v35, 1  ;;  %v322_v3 = vrot.slane %v306_v36, 1  ;;  %v300_v42 = vsub.f32 %v446_v11, %v280_v29 }
  0x9e   :  { %v307_v41 = vand.u32 2147483647, %v299_v37  ;;  %v338_v46 = vsel %vm337_vm15, %v321_v40, 0.0  ;;  %v339_v8 = vsel %vm337_vm15, %v322_v3, 0.0  ;;  %v308_v48 = vand.u32 2147483647, %v300_v42 }
  0x9f   :  { %v282_v30 = vpop.permute.xlu0 %281  ;;  %v284_v31 = vpop.permute.xlu1 %283  ;;  %v340_v52 = vadd.f32 %v339_v8, %v338_v46 }
  0xa0   :  { %v323_v47 = vrot.slane %v307_v41, 1  ;;  %v301_v49 = vsub.f32 %v458_v14, %v282_v30  ;;  %v302_v53 = vsub.f32 %v470_v17, %v284_v31  ;;  %v324_v56 = vrot.slane %v308_v48, 1 }
  0xa2   :  { %v341_v55 = vsel %vm337_vm15, %v323_v47, 0.0  ;;  %v309_v57 = vand.u32 2147483647, %v301_v49  ;;  %v310_v63 = vand.u32 2147483647, %v302_v53  ;;  %v343_v2 = vsel %vm337_vm15, %v324_v56, 0.0 }
  0xa3   :  { %v286_v34 = vpop.permute.xlu0 %285  ;;  %v561_v38 = vpop.permute.xlu1 %287  ;;  %v342_v62 = vadd.f32 %v341_v55, %v340_v52 }
  0xa4   :  { %v325_v4 = vrot.slane %v309_v57, 1  ;;  %v303_v6 = vsub.f32 %v482_v20, %v286_v34  ;;  %v326_v18 = vrot.slane %v310_v63, 1  ;;  %v304_v19 = vsub.f32 %v494_v23, %v561_v38 }
  0xa5   :  { %v344_v16 = vadd.f32 %v343_v2, %v342_v62 }
  0xa6   :  { %v345_v21 = vsel %vm337_vm15, %v325_v4, 0.0  ;;  %v311_v22 = vand.u32 2147483647, %v303_v6  ;;  %v347_v34 = vsel %vm337_vm15, %v326_v18, 0.0  ;;  %v312_v37 = vand.u32 2147483647, %v304_v19 }
  0xa7   :  { %v346_v33 = vadd.f32 %v345_v21, %v344_v16 }
  0xa8   :  { %v327_v36 = vrot.slane %v311_v22, 1  ;;  %v328_v47 = vrot.slane %v312_v37, 1 }
  0xaa   :  { %v349_v8 = vsel %vm337_vm15, %v327_v36, 0.0 }
  0xee   :  { %v111_v39 = vpop.permute.xlu0 %110 }
  0xef   :  { %v134_v54 = vsel %vm101_vm0, %v111_v39, 0.0 }
  0xf0   :  { %v143_v61 = vsel %vm142_vm1, %v134_v54, 0.0 }
  0xf2   :  { %v113_v44 = vpop.permute.xlu1 %112  ;;  %v216_v45 = vpop.permute.xlu0 %215 }
  0xf3   :  { %v135_v11 = vsel %vm101_vm0, %v113_v44, 0.0  ;;  %v240_v10 = vsel %vm239_vm2, %v216_v45, 0.0  ;;  %v348_v44 = vadd.f32 %v347_v34, %v346_v33 }
  0xf4   :  { %v144_v58 = vsel %vm142_vm1, %v135_v11, 0.0 }
  0xf5   :  { %v145_v0 = vadd.f32 %v144_v58, %v143_v61  ;;  %v350_v56 = vadd.f32 %v349_v8, %v348_v44 }
  0xf6   :  { %v218_v50 = vpop.permute.xlu1 %217  ;;  %v220_v51 = vpop.permute.xlu0 %219 }
  0xf7   :  { %v241_v1 = vsel %vm239_vm2, %v218_v50, 0.0  ;;  %v243_v24 = vsel %vm239_vm2, %v220_v51, 0.0 }
  0xf8   :  { %v242_v15 = vadd.f32 %v241_v1, %v240_v10 }
  0xfa   :  { %v115_v59 = vpop.permute.xlu1 %114  ;;  %v117_v14 = vpop.permute.xlu0 %116  ;;  %v244_v32 = vadd.f32 %v243_v24, %v242_v15 }
  0xfb   :  { %v136_v60 = vsel %vm101_vm0, %v115_v59, 0.0  ;;  %v137_v13 = vsel %vm101_vm0, %v117_v14, 0.0  ;;  %v351_v59 = vsel %vm337_vm15, %v328_v47, 0.0 }
  0xfc   :  { %v146_v17 = vsel %vm142_vm1, %v136_v60, 0.0  ;;  %v148_v20 = vsel %vm142_vm1, %v137_v13, 0.0  ;;  %v352_v61 = vadd.f32 %v351_v59, %v350_v56 }
  0xfd   :  { %v147_v12 = vadd.f32 %v146_v17, %v145_v0 }
  0xfe   :  { %v222_v7 = vpop.permute.xlu1 %221  ;;  %v224_v9 = vpop.permute.xlu0 %223 }
  0xff   :  { %v149_v28 = vadd.f32 %v148_v20, %v147_v12  ;;  %v245_v29 = vsel %vm239_vm2, %v222_v7, 0.0  ;;  %v247_v45 = vsel %vm239_vm2, %v224_v9, 0.0 }
 0x100   :  { %v246_v38 = vadd.f32 %v245_v29, %v244_v32 }
 0x102   :  { %v119_v26 = vpop.permute.xlu1 %118  ;;  %v121_v27 = vpop.permute.xlu0 %120  ;;  %v248_v48 = vadd.f32 %v247_v45, %v246_v38 }
 0x103   :  { %v138_v30 = vsel %vm101_vm0, %v119_v26, 0.0  ;;  %v139_v31 = vsel %vm101_vm0, %v121_v27, 0.0 }
 0x104   :  { %v150_v23 = vsel %vm142_vm1, %v138_v30, 0.0  ;;  %v152_v39 = vsel %vm142_vm1, %v139_v31, 0.0 }
 0x105   :  { %v151_v35 = vadd.f32 %v150_v23, %v149_v28 }
 0x106   :  { %v226_v40 = vpop.permute.xlu1 %225  ;;  %v123_v3 = vpop.permute.xlu0 %122 }
 0x107   :  { %v153_v41 = vadd.f32 %v152_v39, %v151_v35  ;;  %v140_v42 = vsel %vm101_vm0, %v123_v3, 0.0  ;;  %v249_v46 = vsel %vm239_vm2, %v226_v40, 0.0 }
 0x108   :  { %v154_v43 = vsel %vm142_vm1, %v140_v42, 0.0  ;;  %v250_v53 = vadd.f32 %v249_v46, %v248_v48 }
 0x109   :  { %v155_v51 = vadd.f32 %v154_v43, %v153_v41 }
 0x10a   :  { %v228_v49 = vpop.permute.xlu1 %227  ;;  %v125_v50 = vpop.permute.xlu0 %124 }
 0x10b   :  { %v251_v11 = vsel %vm239_vm2, %v228_v49, 0.0  ;;  %v141_v52 = vsel %vm101_vm0, %v125_v50, 0.0 }
 0x10c   :  { %v156_v54 = vsel %vm142_vm1, %v141_v52, 0.0  ;;  %v252_v57 = vadd.f32 %v251_v11, %v250_v53 }
 0x10d   :  { %v157_v55 = vadd.f32 %v156_v54, %v155_v51 }
 0x10e   :  { %v230_v58 = vpop.permute.xlu1 %229 }
 0x10f   :  { %v253_v14 = vsel %vm239_vm2, %v230_v58, 0.0  ;;  %158 = vadd.xlane.f32.xlu0 %v157_v55 }
 0x110   :  { %v254_v60 = vadd.f32 %v253_v14, %v252_v57 }
 0x112   :  { %255 = vadd.xlane.f32.xlu1 %v254_v60 }
 0x113   :  { %353 = vadd.xlane.f32.xlu0 %v352_v61 }
 0x19c   :  { %v159_v17 = vpop.xlane.xlu0 %158 }
 0x19d   :  { %v160_v62 = vrot.slane %v159_v17, 4 }
 0x19f   :  { %v161_v5 = vadd.f32 %v160_v62, %v159_v17  ;;  %v256_v63 = vpop.xlane.xlu1 %255 }
 0x1a0   :  { %v257_v0 = vrot.slane %v256_v63, 4  ;;  %v354_v1 = vpop.xlane.xlu0 %353 }
 0x1a1   :  { %v162_v2 = vrot.slane %v161_v5, 2  ;;  %v355_v4 = vrot.slane %v354_v1, 4 }
 0x1a2   :  { %v258_v6 = vadd.f32 %v257_v0, %v256_v63 }
 0x1a3   :  { %v356_v7 = vadd.f32 %v355_v4, %v354_v1  ;;  %v163_v9 = vadd.f32 %v162_v2, %v161_v5 }
 0x1a4   :  { %v259_v10 = vrot.slane %v258_v6, 2 }
 0x1a5   :  { %v357_v12 = vrot.slane %v356_v7, 2  ;;  %v164_v13 = vrot.slane %v163_v9, 1 }
 0x1a6   :  { %v260_v15 = vadd.f32 %v259_v10, %v258_v6 }
 0x1a7   :  { %v358_v16 = vadd.f32 %v357_v12, %v356_v7  ;;  %v165_v18 = vadd.f32 %v164_v13, %v163_v9 }
 0x1a8   :  { %v261_v19 = vrot.slane %v260_v15, 1 }
 0x1a9   :  { %373 = vpush %v165_v18  ;;  %v359_v21 = vrot.slane %v358_v16, 1 }
 0x1aa   :  { %v262_v22 = vadd.f32 %v261_v19, %v260_v15 }
 0x1ab   :  { %v360_v24 = vadd.f32 %v359_v21, %v358_v16 }
 0x1ac   :  { %375 = vpush %v262_v22 }
 0x1ad   :  { %377 = vpush %v360_v24 }
 0x1da   :  { %s374_s15 = spop %373 }
 0x1db   :  { %v365_v20 = vstv %s374_s15 }
 0x1dd   :  { %s376_s16 = spop %375 }
 0x1de   :  { %s378_s17 = spop %377 }
 0x1df   :  { %s362_s18 = sadd.f32 %s378_s17, %s376_s16 }
 0x1e1   :  { %v364_v26 = vstv %s362_s18 }
 0x1e2   :  { %v366_v27 = vsel %vm363_vm3, %v364_v26, %v365_v20 }
 0x1e3   :  { %368 = vst.msk [vmem:[%s618_s2] sm:$0x1] %vm367_vm4, %v366_v27 }

</bundles_post_ra>
